<compile_context>
chip_gen: v5e
topology: v5e:2x2
jax: 0.10.0
libtpu: 0.0.40
codegen_flags: <defaults>
</compile_context>

<pallas_src>
import functools
import math

import jax
import jax.numpy as jnp
import numpy as np
from jax.experimental import pallas as pl
from jax.experimental.pallas import tpu as pltpu

# MXU operand dtype for the feature projection (accumulation is always f32).
_MXU_DTYPE = jnp.bfloat16

# Conservative per-kernel byte budget for VMEM data blocks (fits the v5e
# 16 MiB scoped default; v6e/v7x have >= 32 MiB scoped by default).
_VMEM_BUDGET = 10 * 1024 * 1024

# Rows of DMA issue per statically-unrolled chunk in the HBM gather kernel.
_ISSUE_UNROLL = 8


def _round_up(x, m):
    return ((x + m - 1) // m) * m


def _pick_row_tile(n_rows, per_row_bytes, extra_bytes=0, max_tile=512):
    """Row-tile size (multiple of 8) whose pipeline blocks fit _VMEM_BUDGET."""
    tb = max_tile
    while tb > 8 and tb * per_row_bytes + extra_bytes > _VMEM_BUDGET:
        tb //= 2
    tb = max(8, min(tb, _round_up(max(n_rows, 1), 8)))
    # Give a 2-TC chip (v7x) at least two grid steps when there is enough work
    # so dimension_semantics="parallel" actually engages both TensorCores.
    if _round_up(n_rows, tb) == tb and n_rows > 16:
        tb = _round_up((n_rows + 1) // 2, 8)
    return tb


def _is_identity_idx(node_idx, num_nodes):
    """True iff node_idx is None or a concrete arange(num_nodes)."""
    if node_idx is None:
        return True
    try:
        idx = np.asarray(node_idx)
    except Exception:           # traced under jit -> take the general gather path
        return False
    return (idx.ndim == 1 and idx.shape[0] == num_nodes
            and bool(np.array_equal(idx, np.arange(num_nodes))))


# ----------------------------------------------------------------------------
# Deterministic stand-in for RRGCN's fan_out_normal_seed:
#   normal with std = extra_scale / sqrt(fan_out)
# (extra_scale lets the caller fold additional constant scales into the
#  generated parameter instead of re-applying them per kernel tile).
# ----------------------------------------------------------------------------
def fan_out_normal_seed(shape, seed, extra_scale=1.0):
    key = jax.random.PRNGKey(seed)
    std = extra_scale / math.sqrt(float(shape[1]))
    return jax.random.normal(key, shape, dtype=jnp.float32) * std


# ----------------------------------------------------------------------------
# Kernel 1: feature projection  out = feat @ w_scaled   (scale pre-folded in w)
# ----------------------------------------------------------------------------
def _proj_kernel(f_ref, w_ref, o_ref):
    # Cast the activations in-kernel (VPU slot is free in this MXU kernel);
    # the weight already arrives in the MXU dtype.
    o_ref[...] = jnp.dot(f_ref[...].astype(w_ref.dtype), w_ref[...],
                         preferred_element_type=jnp.float32).astype(o_ref.dtype)


def project_features(feat, w_scaled):
    """feat @ w_scaled on the MXU (f32 in, bf16 weight, f32 accumulate).
    K (feature dim) is small -> single shot, no K grid axis / accumulator."""
    M, F = feat.shape
    F2, E = w_scaled.shape
    assert F == F2 and E % 128 == 0

    Mp = _round_up(M, 8)
    if Mp <= 256:
        tm = Mp
    else:                              # 256-aligned tiles for the 256x256 MXUs
        tm = 256
        Mp = _round_up(M, tm)
    if Mp != M:
        feat = jnp.pad(feat, ((0, Mp - M), (0, 0)))

    if E <= 512:
        tn = E                         # weight tile stays resident across i
    elif E % 512 == 0:
        tn = 512
    elif E % 256 == 0:
        tn = 256
    else:
        tn = 128

    out = pl.pallas_call(
        _proj_kernel,
        out_shape=jax.ShapeDtypeStruct((Mp, E), jnp.float32),
        grid=(Mp // tm, E // tn),
        in_specs=[
            pl.BlockSpec((tm, F), lambda i, j: (i, 0)),
            pl.BlockSpec((F, tn), lambda i, j: (0, j)),
        ],
        out_specs=pl.BlockSpec((tm, tn), lambda i, j: (i, j)),
        compiler_params=pltpu.CompilerParams(
            dimension_semantics=("parallel", "parallel")),
    )(feat, w_scaled)
    return out[:M]


# ----------------------------------------------------------------------------
# Kernel 2: identity-index streaming (sequential full-BW read of node_embs)
#   out[i, :] = node_embs[i, :] * atten[i]          (plain variant)
#   featured rows overridden with proj[f, :] * atten[feat_idx[f]]
# ----------------------------------------------------------------------------
def _stream_plain_kernel(emb_ref, atten_ref, out_ref):
    out_ref[...] = emb_ref[...] * atten_ref[...]


def _stream_feat_kernel(n_feat, tb, feat_idx_ref, emb_ref, atten_ref, proj_ref,
                        out_ref):
    out_ref[...] = emb_ref[...] * atten_ref[...]
    base = pl.multiple_of(pl.program_id(0) * tb, tb)

    # Patch the (few) featured rows that land in this tile from the resident
    # projection block; feat_idx lives in SMEM (scalar prefetch).
    @pl.loop(0, n_feat)
    def _(f):
        r = feat_idx_ref[f] - base

        @pl.when((r >= 0) & (r < tb))
        def _():
            out_ref[pl.ds(r, 1), :] = (proj_ref[pl.ds(f, 1), :]
                                       * atten_ref[pl.ds(r, 1), :])


def stream_encode(node_embs, atten_vec, proj=None, feat_idx=None, n_feat=0):
    N, E = node_embs.shape
    has_feat = proj is not None and n_feat > 0
    it = node_embs.dtype.itemsize
    extra = 2 * proj.size * proj.dtype.itemsize if has_feat else 0
    tb = _pick_row_tile(N, (4 * E + 2) * it, extra_bytes=extra, max_tile=512)

    Np = _round_up(N, tb)
    if Np != N:
        node_embs = jnp.pad(node_embs, ((0, Np - N), (0, 0)))
        atten_vec = jnp.pad(atten_vec, (0, Np - N))
    atten_col = atten_vec.reshape(Np, 1).astype(node_embs.dtype)
    grid = (Np // tb,)

    if has_feat:
        out = pl.pallas_call(
            functools.partial(_stream_feat_kernel, n_feat, tb),
            out_shape=jax.ShapeDtypeStruct((Np, E), node_embs.dtype),
            grid_spec=pltpu.PrefetchScalarGridSpec(
                num_scalar_prefetch=1,                 # feat_idx -> SMEM
                grid=grid,
                in_specs=[
                    pl.BlockSpec((tb, E), lambda i, f: (i, 0)),
                    pl.BlockSpec((tb, 1), lambda i, f: (i, 0)),
                    pl.BlockSpec(proj.shape, lambda i, f: (0, 0)),  # resident
                ],
                out_specs=pl.BlockSpec((tb, E), lambda i, f: (i, 0)),
            ),
            compiler_params=pltpu.CompilerParams(
                dimension_semantics=("parallel",)),
        )(feat_idx.astype(jnp.int32), node_embs, atten_col,
          proj.astype(node_embs.dtype))
    else:
        out = pl.pallas_call(
            _stream_plain_kernel,
            out_shape=jax.ShapeDtypeStruct((Np, E), node_embs.dtype),
            grid=grid,
            in_specs=[
                pl.BlockSpec((tb, E), lambda i: (i, 0)),
                pl.BlockSpec((tb, 1), lambda i: (i, 0)),
            ],
            out_specs=pl.BlockSpec((tb, E), lambda i: (i, 0)),
            compiler_params=pltpu.CompilerParams(
                dimension_semantics=("parallel",)),
        )(node_embs, atten_col)
    return out[:N]


# ----------------------------------------------------------------------------
# Kernel 3a: VMEM-resident table gather (small graphs): per-row selection from
# full node_embs / proj VMEM blocks, no HBM row DMAs.
# ----------------------------------------------------------------------------
def _resident_gather_kernel(num_nodes, tm, has_feat,
                            src_ref, atten_ref, emb_ref, proj_ref, out_ref):
    base = pl.program_id(0) * tm

    @pl.loop(0, tm)
    def _(r):
        s = src_ref[base + r]
        if has_feat:
            use_emb = s < num_nodes
            e_row = emb_ref[pl.ds(jnp.where(use_emb, s, 0), 1), :]
            p_row = proj_ref[pl.ds(jnp.where(use_emb, 0, s - num_nodes), 1), :]
            row = jnp.where(use_emb, e_row, p_row)
        else:
            row = emb_ref[pl.ds(s, 1), :]
        out_ref[pl.ds(r, 1), :] = row * atten_ref[pl.ds(r, 1), :]


def gather_attenuate_resident(node_embs, proj_all, src_idx, atten_sel, has_feat):
    num_nodes, E = node_embs.shape
    n_proj = proj_all.shape[0]
    N = src_idx.shape[0]
    it = node_embs.dtype.itemsize
    table_bytes = (node_embs.size + proj_all.size) * it
    tm = _pick_row_tile(N, (2 * E + 2) * it, extra_bytes=2 * table_bytes,
                        max_tile=512)
    Np = _round_up(N, tm)
    if Np != N:
        src_idx = jnp.pad(src_idx, (0, Np - N))        # padded rows read emb row 0
        atten_sel = jnp.pad(atten_sel, (0, Np - N))
    atten_col = atten_sel.reshape(Np, 1).astype(node_embs.dtype)

    out = pl.pallas_call(
        functools.partial(_resident_gather_kernel, num_nodes, tm, has_feat),
        out_shape=jax.ShapeDtypeStruct((Np, E), node_embs.dtype),
        grid_spec=pltpu.PrefetchScalarGridSpec(
            num_scalar_prefetch=1,                     # src_idx -> SMEM
            grid=(Np // tm,),
            in_specs=[
                pl.BlockSpec((tm, 1), lambda i, src: (i, 0)),
                pl.BlockSpec((num_nodes, E), lambda i, src: (0, 0)),  # resident
                pl.BlockSpec((n_proj, E), lambda i, src: (0, 0)),     # resident
            ],
            out_specs=pl.BlockSpec((tm, E), lambda i, src: (i, 0)),
        ),
        compiler_params=pltpu.CompilerParams(dimension_semantics=("parallel",)),
    )(src_idx.astype(jnp.int32), atten_col, node_embs, proj_all)
    return out[:N]


# ----------------------------------------------------------------------------
# Kernel 3b: HBM row gather (large graphs): double-buffered scratch, one
# aggregate semaphore wait per tile, unrolled issue chunks.
#   out[i, :] = node_embs[s, :]            if s = src_idx[i] <  num_nodes
#               proj[s - num_nodes, :]     if s            >= num_nodes
#   ... multiplied by the pre-gathered attenuation atten_sel[i].
# ----------------------------------------------------------------------------
def _hbm_gather_kernel(num_nodes, tm, has_feat,
                       src_ref, atten_ref, emb_hbm, proj_hbm, out_ref, buf, sem):
    step = pl.program_id(0)
    n_steps = pl.num_programs(0)
    slot = step % 2

    def issue_tile(tile_idx, slot_idx):
        base = tile_idx * tm
        # Issue row DMAs in statically-unrolled chunks so the scheduler can
        # pack the scalar/descriptor work (this loop is the issue-bound path).
        @pl.loop(0, tm // _ISSUE_UNROLL)
        def _(c):
            r0 = c * _ISSUE_UNROLL
            for u in range(_ISSUE_UNROLL):
                r = r0 + u
                s = src_ref[base + r]
                if has_feat:
                    @pl.when(s < num_nodes)
                    def _():
                        pltpu.make_async_copy(
                            emb_hbm.at[pl.ds(s, 1)],
                            buf.at[slot_idx].at[pl.ds(r, 1)],
                            sem.at[slot_idx]).start()

                    @pl.when(s >= num_nodes)
                    def _():
                        pltpu.make_async_copy(
                            proj_hbm.at[pl.ds(s - num_nodes, 1)],
                            buf.at[slot_idx].at[pl.ds(r, 1)],
                            sem.at[slot_idx]).start()
                else:
                    # branch-free variant: everything comes from node_embs
                    pltpu.make_async_copy(
                        emb_hbm.at[pl.ds(s, 1)],
                        buf.at[slot_idx].at[pl.ds(r, 1)],
                        sem.at[slot_idx]).start()

    # prime the pipeline with this step's own tile on the very first step
    @pl.when(step == 0)
    def _():
        issue_tile(0, 0)

    # prefetch the NEXT tile into the other slot (overlaps with this tile's
    # wait + multiply + output writeback)
    @pl.when(step + 1 < n_steps)
    def _():
        issue_tile(step + 1, 1 - slot)

    # ONE aggregate wait: every row copy is exactly E*itemsize bytes and
    # signals sem[slot]; a single (tm, E) descriptor on the same semaphore
    # accounts for the identical byte total (replaces tm serial waits).
    pltpu.make_async_copy(buf.at[slot], buf.at[slot], sem.at[slot]).wait()

    # one lane-dense (tm, E) store, scaled by the (tm, 1) attenuation block
    out_ref[...] = buf[slot] * atten_ref[...]


def gather_attenuate_hbm(node_embs, proj_all, src_idx, atten_sel, has_feat):
    num_nodes, E = node_embs.shape
    # aggregate-wait accounting requires identical row byte size for both tables
    assert proj_all.dtype == node_embs.dtype and proj_all.shape[1] == E, (
        "proj table rows must match node_embs rows in dtype and width")
    N = src_idx.shape[0]
    it = node_embs.dtype.itemsize
    tm = _pick_row_tile(N, (4 * E + 2) * it, max_tile=1024)
    Np = _round_up(N, tm)
    if Np != N:
        src_idx = jnp.pad(src_idx, (0, Np - N))        # padded rows read emb row 0
        atten_sel = jnp.pad(atten_sel, (0, Np - N))
    atten_col = atten_sel.reshape(Np, 1).astype(node_embs.dtype)

    out = pl.pallas_call(
        functools.partial(_hbm_gather_kernel, num_nodes, tm, has_feat),
        out_shape=jax.ShapeDtypeStruct((Np, E), node_embs.dtype),
        grid_spec=pltpu.PrefetchScalarGridSpec(
            num_scalar_prefetch=1,                     # src_idx -> SMEM
            grid=(Np // tm,),
            in_specs=[
                pl.BlockSpec((tm, 1), lambda i, src: (i, 0)),  # attenuation tile
                pl.BlockSpec(memory_space=pl.ANY),             # node_embs (HBM)
                pl.BlockSpec(memory_space=pl.ANY),             # proj table (HBM)
            ],
            out_specs=pl.BlockSpec((tm, E), lambda i, src: (i, 0)),
            scratch_shapes=[
                pltpu.VMEM((2, tm, E), node_embs.dtype),       # double buffer
                pltpu.SemaphoreType.DMA((2,)),
            ],
        ),
        # cross-grid-step prefetch requires sequential execution of this axis
        compiler_params=pltpu.CompilerParams(dimension_semantics=("arbitrary",)),
    )(src_idx.astype(jnp.int32), atten_col, node_embs, proj_all)
    return out[:N]


def gather_attenuate(node_embs, proj_all, src_idx, atten_sel, has_feat,
                     resident_budget=_VMEM_BUDGET):
    """Dispatch: VMEM-resident table kernel when it fits, else HBM gather."""
    _, E = node_embs.shape
    it = node_embs.dtype.itemsize
    table_bytes = (node_embs.size + proj_all.size) * it
    # 2x: full-table blocks are still allocated double-buffered by the pipeline
    if 2 * table_bytes + 16 * (2 * E + 2) * it <= resident_budget:
        return gather_attenuate_resident(node_embs, proj_all, src_idx,
                                         atten_sel, has_feat)
    return gather_attenuate_hbm(node_embs, proj_all, src_idx, atten_sel,
                                has_feat)


# ----------------------------------------------------------------------------
# NodeEncoder in JAX, forward semantics matching the PyTorch module.
# ----------------------------------------------------------------------------
class NodeEncoderPallas:
    def __init__(self, emb_size, num_nodes, seed=42, attenuation_type=None):
        self.emb_size = emb_size
        self.num_nodes = num_nodes
        self.seed = seed
        self.attenuation_type = attenuation_type
        # small-graph fast-path budget; set to 0 to force the HBM gather kernel
        self.resident_table_budget = _VMEM_BUDGET
        init_key = jax.random.PRNGKey(seed + 10_000)
        if attenuation_type is None:
            self.attenuation = None
        elif attenuation_type == 0:
            # torch.nn.init.normal_(attenuation, 0.5, 1/num_nodes)
            self.attenuation = 0.5 + jax.random.normal(
                init_key, (1,), jnp.float32) / num_nodes
        elif attenuation_type == 1:
            self.attenuation = 0.5 + jax.random.normal(
                init_key, (num_nodes,), jnp.float32) / num_nodes
        else:
            raise ValueError(f"Expected None, 0 or 1, got {attenuation_type}")

    def __call__(self, node_features=None, node_idx=None):
        n_nodes, emb = self.num_nodes, self.emb_size
        node_embs = fan_out_normal_seed((n_nodes, emb), seed=self.seed)

        # fold all attenuation variants into a per-node scale vector (or None)
        if self.attenuation_type is None:
            atten_vec = None
        elif self.attenuation_type == 0:
            atten_vec = jnp.full((n_nodes,), self.attenuation[0], jnp.float32)
        else:
            atten_vec = self.attenuation.astype(jnp.float32)

        have_feat = node_features is not None and len(node_features) > 0

        # featured-node projection (MXU) and bookkeeping
        proj_all = feat_idx_all = None
        if have_feat:
            # TODO(synk): the torch.isin(idx, node_idx) membership assertion of
            # the original module is a host-side check and is not reproduced.
            projs, fidx = [], []
            for type_id, (t_idx, feat) in node_features.items():
                t_idx = jnp.asarray(t_idx).ravel().astype(jnp.int32)
                feat = jnp.asarray(feat, jnp.float32)
                assert feat.ndim == 2 and feat.shape[0] == t_idx.shape[0]
                w = fan_out_normal_seed(
                    (feat.shape[1], emb), seed=self.seed + type_id,
                    extra_scale=1.0 / math.sqrt(float(feat.shape[1])),
                ).astype(_MXU_DTYPE)          # bf16 weight: half the weight DMA
                projs.append(project_features(feat, w))
                fidx.append(t_idx)
            proj_all = jnp.concatenate(projs, axis=0)
            feat_idx_all = jnp.concatenate(fidx, axis=0)

        identity = _is_identity_idx(node_idx, n_nodes)

        # ---- streaming fast paths: identity node index ----
        if identity:
            if not have_feat and atten_vec is None:
                return node_embs                       # nothing to do at all
            av = (atten_vec if atten_vec is not None
                  else jnp.ones((n_nodes,), jnp.float32))
            if have_feat:
                n_feat = proj_all.shape[0]
                n_pad = _round_up(max(n_feat, 8), 8)
                proj_pad = (jnp.pad(proj_all, ((0, n_pad - n_feat), (0, 0)))
                            if n_pad != n_feat else proj_all)
                return stream_encode(node_embs, av, proj_pad, feat_idx_all,
                                     n_feat)
            return stream_encode(node_embs, av)

        # ---- general gather path (arbitrary node_idx) ----
        idx = jnp.asarray(node_idx).ravel().astype(jnp.int32)
        if have_feat:
            # small int32 remap so featured rows are read from the projection
            # table instead of node_embs (avoids a full [num_nodes, emb] copy)
            n_feat = proj_all.shape[0]
            remap = jnp.arange(n_nodes, dtype=jnp.int32).at[feat_idx_all].set(
                n_nodes + jnp.arange(n_feat, dtype=jnp.int32))
            src_idx = remap[idx]
            n_pad = _round_up(max(n_feat, 8), 8)
            proj_pad = (jnp.pad(proj_all, ((0, n_pad - n_feat), (0, 0)))
                        if n_pad != n_feat else proj_all)
        else:
            src_idx = idx
            proj_pad = jnp.zeros((8, emb), node_embs.dtype)   # dummy, never read

        atten_sel = (jnp.ones((idx.shape[0],), jnp.float32) if atten_vec is None
                     else atten_vec[idx])
        return gather_attenuate(node_embs, proj_pad, src_idx, atten_sel,
                                has_feat=have_feat,
                                resident_budget=self.resident_table_budget)


# ----------------------------------------------------------------------------
if __name__ == "__main__":
    EMB_SIZE = 128
    NUM_NODES = 64
    FEAT_DIM = 16
    SEED = 42

    key = jax.random.PRNGKey(0)

    # nodes [3, 5, 7] are literals of type 5 with 16-d feature vectors
    lit_idx = jnp.array([3, 5, 7], dtype=jnp.int32)
    lit_feat = jax.random.normal(key, (3, FEAT_DIM), jnp.float32)
    node_features = {5: (lit_idx, lit_feat)}
    node_idx = jnp.arange(NUM_NODES, dtype=jnp.int32)

    # shared pure-JAX reference pieces
    ref_embs = fan_out_normal_seed((NUM_NODES, EMB_SIZE), seed=SEED)
    ref_w = fan_out_normal_seed((FEAT_DIM, EMB_SIZE), seed=SEED + 5)
    ref_proj = (lit_feat / math.sqrt(FEAT_DIM)) @ ref_w
    ref_full = ref_embs.at[lit_idx].set(ref_proj)

    # --- path 1: features + per-node attenuation + identity node_idx
    #     -> projection kernel + streaming kernel with featured-row override
    enc1 = NodeEncoderPallas(EMB_SIZE, NUM_NODES, seed=SEED, attenuation_type=1)
    out1 = jax.block_until_ready(enc1(node_features=node_features,
                                      node_idx=node_idx))
    ref1 = ref_full[node_idx] * enc1.attenuation[node_idx, None]
    assert out1.shape == (NUM_NODES, EMB_SIZE)
    assert jnp.allclose(out1, ref1, rtol=1e-2, atol=1e-2)

    # --- path 2: identity fast path with scalar attenuation (plain streaming)
    enc2 = NodeEncoderPallas(EMB_SIZE, NUM_NODES, seed=SEED, attenuation_type=0)
    out2 = jax.block_until_ready(enc2())
    ref2 = ref_embs * enc2.attenuation[0]
    assert jnp.allclose(out2, ref2, rtol=1e-5, atol=1e-6)

    # --- path 3: subgraph gather, no features, no attenuation
    #     -> VMEM-resident table gather kernel (exact)
    enc3 = NodeEncoderPallas(EMB_SIZE, NUM_NODES, seed=SEED,
                             attenuation_type=None)
    sub_idx = jnp.array([5, 1, 63, 7, 0], dtype=jnp.int32)
    out3 = jax.block_until_ready(enc3(node_idx=sub_idx))
    ref3 = ref_embs[sub_idx]
    assert out3.shape == (5, EMB_SIZE)
    assert jnp.allclose(out3, ref3, rtol=1e-6, atol=1e-6)

    # --- path 4: arbitrary node_idx + features + attenuation, forced HBM
    #     double-buffered gather kernel (featured-branch variant)
    enc4 = NodeEncoderPallas(EMB_SIZE, NUM_NODES, seed=SEED, attenuation_type=1)
    enc4.resident_table_budget = 0            # force the large-graph HBM path
    idx4 = jnp.array([7, 2, 5, 0, 63, 3, 1, 9], dtype=jnp.int32)
    out4 = jax.block_until_ready(enc4(node_features=node_features,
                                      node_idx=idx4))
    ref4 = ref_full[idx4] * enc4.attenuation[idx4, None]
    assert out4.shape == (8, EMB_SIZE)
    assert jnp.allclose(out4, ref4, rtol=1e-2, atol=1e-2)

    # --- path 5: arbitrary node_idx, no features/attenuation, forced HBM
    #     gather kernel (branch-free variant, exact)
    enc5 = NodeEncoderPallas(EMB_SIZE, NUM_NODES, seed=SEED,
                             attenuation_type=None)
    enc5.resident_table_budget = 0
    out5 = jax.block_until_ready(enc5(node_idx=sub_idx))
    assert jnp.allclose(out5, ref3, rtol=1e-6, atol=1e-6)

    print("KERNEL_OK")
</pallas_src>

<mosaic_0001>
module attributes {stable_mosaic.version = 11 : i64} {
  func.func @_proj_kernel(%arg0: i32, %arg1: i32, %arg2: memref<8x16xf32, #tpu.memory_space<vmem>>, %arg3: memref<16x128xbf16, #tpu.memory_space<vmem>>, %arg4: memref<8x128xf32, #tpu.memory_space<vmem>>) attributes {dimension_semantics = [#tpu.dimension_semantics<parallel>, #tpu.dimension_semantics<parallel>], iteration_bounds = array<i64: 1, 1>, scalar_prefetch = 0 : i64, scratch_operands = 0 : i64, tpu.core_type = #tpu.core_type<tc>, window_params = [{transform_indices = @transform_0, window_bounds = array<i64: 8, 16>}, {transform_indices = @transform_1, window_bounds = array<i64: 16, 128>}, {transform_indices = @transform_2, window_bounds = array<i64: 8, 128>}]} {
    %c0 = arith.constant 0 : index
    %c0_0 = arith.constant 0 : index
    %0 = vector.load %arg2[%c0, %c0_0] : memref<8x16xf32, #tpu.memory_space<vmem>>, vector<8x16xf32>
    %1 = arith.truncf %0 : vector<8x16xf32> to vector<8x16xbf16>
    %c0_1 = arith.constant 0 : index
    %c0_2 = arith.constant 0 : index
    %2 = vector.load %arg3[%c0_1, %c0_2] : memref<16x128xbf16, #tpu.memory_space<vmem>>, vector<16x128xbf16>
    %cst = arith.constant dense<0.000000e+00> : vector<8x128xf32>
    %3 = tpu.matmul %1, %2, %cst {dimension_numbers = #tpu.dot_dimension_numbers<[1], [0], [0], [1], [0, 0, 1, 1], [], []>} : vector<8x16xbf16>, vector<16x128xbf16>, vector<8x128xf32> -> vector<8x128xf32>
    %c0_3 = arith.constant 0 : index
    %c0_4 = arith.constant 0 : index
    %4 = vector.load %arg4[%c0_3, %c0_4] : memref<8x128xf32, #tpu.memory_space<vmem>>, vector<8x128xf32>
    tpu.vector_store %arg4[%c0_3, %c0_4], %3 {strides = array<i32>} : memref<8x128xf32, #tpu.memory_space<vmem>>, vector<8x128xf32>,
    return
  }
  func.func @transform_0(%arg0: i32, %arg1: i32) -> (i32, i32) {
    %c0_i32 = arith.constant 0 : i32
    %c0_i32_0 = arith.constant 0 : i32
    return %arg0, %c0_i32 : i32, i32
  }
  func.func @transform_1(%arg0: i32, %arg1: i32) -> (i32, i32) {
    %c0_i32 = arith.constant 0 : i32
    %c0_i32_0 = arith.constant 0 : i32
    return %c0_i32, %arg1 : i32, i32
  }
  func.func @transform_2(%arg0: i32, %arg1: i32) -> (i32, i32) {
    %c0_i32 = arith.constant 0 : i32
    return %arg0, %arg1 : i32, i32
  }
}

</mosaic_0001>

<bundles_post_ra>
// kernel: tpu_custom_call.1
= control target key start
LH: loop header
LB: loop body
LE: loop exit
PB: predicated region body
PF: predicated region fallthrough
CT: control target
= control target key end

     0   :  { %7 = vsyncpa [#allocation3], 0  ;;  %s207_s0 = inlined_call_operand.hbm [shape: f32[8,16], index: 0, kind: input, shape index: {}]   ;;  %s208_s1 = inlined_call_operand.hbm [shape: bf16[16,128], index: 1, kind: input, shape index: {}]   ;;  %s209_s2 = inlined_call_operand.hbm [shape: f32[8,128], index: 2, kind: output, shape index: {}]  }
   0x1   :  { %8 = vsyncpa [#allocation6], 0 }
   0x2   :  { %9 = vsyncpa [#allocation4], 0  ;;  %s15_s11 = sshll.u32 %s207_s0, 4  ;;  %s178_s12 = smov [#allocation2]   ;;  %s16_s11 = int_to_ptr.hbm [resolvable:$true] %s15_s11 }
   0x3   :  { %s17_s13 = sshll.u32 %s178_s12, 4  ;;  %s25_s16 = sshll.u32 %s208_s1, 4  ;;  %s18_s13 = int_to_ptr.vmem [resolvable:$true] %s17_s13  ;;  %s26_s16 = int_to_ptr.hbm [resolvable:$true] %s25_s16 }
   0x4   :  { %20 = dma.hbm_to_vmem [thread:$0]  %s16_s11, 128, %s18_s13, [#allocation3]  }
   0x5   :  { %s179_s17 = smov [#allocation5]   ;;  %s180_s19 = smov 64  }
   0x6   :  { %s27_s18 = sshll.u32 %s179_s17, 4  ;;  %s181_s20 = smov 4   ;;  %s28_s18 = int_to_ptr.vmem [resolvable:$true] %s27_s18 }
   0x7   :  { %33 = dma.hbm_to_vmem [thread:$0]  %s26_s16, 128, %s28_s18, [#allocation6], %s180_s19, %s180_s19, %s181_s20  }
   0x8   :  { %172 = dma.done.wait [#allocation3], 128  }
   0x9   :  { %173 = vsyncadd [#allocation3], 4294967168 }
   0xa   :  { %174 = dma.done.wait [#allocation6], 128  }
   0xb   :  { %175 = vsyncadd [#allocation6], 4294967168  ;;  %v94_v0 = vld [vmem:[#allocation5] sm:$0xff]  ;;  %v43_v1 = vld [vmem:[#allocation2] sm:$0xff]  ;;  %vm53_vm0 = vcmask 130048   ;;  %s182_s0 = smov [#allocation7]  }
   0xc   :  { %v44_v2 = vpack.c.bf16 %v43_v1, %v43_v1  ;;  %64 = vmatpush.bf16.msra.mxu0 %v94_v0  ;;  %s76_s1 = sshll.u32 %s182_s0, 4  ;;  %s78_s23 = sshll.u32 %s209_s2, 4  ;;  %s77_s1 = int_to_ptr.vmem [resolvable:$true] %s76_s1  ;;  %s79_s23 = int_to_ptr.hbm [resolvable:$true] %s78_s23 }
   0xf   :  { %93 = vmatmul.msk.bf16.vlgmr.msra.gmra.mxu0 %vm53_vm0, %v44_v2 }
  0x8c   :  { %v66_v3 = vpop.f32.mrf.mxu0 }
  0x8d   :  { %70 = vst [vmem:[#allocation7] sm:$0xff] %v66_v3 }
  0x8e   :  { %81 = dma.vmem_to_hbm [thread:$0]  %s77_s1, 128, %s79_s23, [#allocation4]  }
  0x94   :  { %v68_v4 = vpop.f32.mrf.mxu0 }
  0x95   :  { %176 = dma.done.wait [#allocation4], 128  }
  0x96   :  { %177 = vsyncadd [#allocation4], 4294967168 }
  0x97   :  { %86 = vsyncpa [#allocation3], 1 }
  0x98   :  { %87 = vsyncpa [#allocation6], 1 }
  0x99   :  { %88 = vsyncpa [#allocation4], 1 }

</bundles_post_ra>
